<compile_context>
chip_gen: v6e
topology: v6e:2x2x1
jax: 0.10.0
libtpu: 0.0.40
codegen_flags: <defaults>
</compile_context>

<pallas_src>
import jax
import jax.numpy as jnp
from jax.experimental import pallas as pl
from jax.experimental.pallas import tpu as pltpu

# ------------------------------------------------------------------
# Config (mirrors GlobalFusion.__init__)
# ------------------------------------------------------------------
class Cfg:
    THRESHOLDS = [0.0, 0.0, 0.0]   # len 3 -> n_scales = 2
    VOXEL_SIZE = 0.04
    N_VOX = [16, 16, 16]

CH_IN = [64, 32, 32]               # per-layer feature channels (ch_in)
LAYER = 2                          # finest layer
N_SCALES = len(Cfg.THRESHOLDS) - 1
INTERVAL = 2 ** (N_SCALES - LAYER)                          # = 1
C = CH_IN[LAYER]                                            # 32
DIM = [n // (2 ** (N_SCALES - LAYER)) for n in Cfg.N_VOX]   # [16, 16, 16]

PACK = 4                    # voxel rows packed per 128-lane row
CP = C * PACK               # 128 packed channel width (lane-dense)
TM_COLS = 16                # [t*m (4) | m (4) | 1 | zero pad (7)]
TILE_ROWS = 512             # packed rows per grid step (= 2048 voxels)


def _round_up(a, b):
    return ((a + b - 1) // b) * b


# ------------------------------------------------------------------
# Pallas kernel: tsdf_mlp + pointwise ConvGRU fusion (lane-packed)
# ------------------------------------------------------------------
def convgru_fuse_kernel(h_ref, x_ref, tm_ref, wmain_ref, wtm_ref, out_ref):
    # h_ref/x_ref: (T, 128) f32, 4 voxels of 32 channels per row
    # tm_ref:      (T, 16)  f32, [t*m | m | 1 | 0-pad] per packed row
    # wmain_ref:   (128, 768) bf16 = [ [Wzh|Wrh]_bd | [Wzx|Wrx|Wqx]_bd | Wqh_bd ]
    # wtm_ref:     (16, 384)  f32  = tsdf_mlp folded through Wx + gate biases
    h = h_ref[...]
    x = x_ref[...]
    hb = h.astype(jnp.bfloat16)
    xb = x.astype(jnp.bfloat16)

    # Fused gate pre-activations (three lane-dense MXU dots + one tiny K=16 dot).
    gh = jnp.dot(hb, wmain_ref[:, 0:2 * CP],
                 preferred_element_type=jnp.float32)                 # (T, 256) [z_h | r_h]
    gx = (jnp.dot(xb, wmain_ref[:, 2 * CP:5 * CP],
                  preferred_element_type=jnp.float32)
          + jnp.dot(tm_ref[...], wtm_ref[...],
                    preferred_element_type=jnp.float32))             # (T, 384) [z_x | r_x | q_x] + biases

    z = jax.nn.sigmoid(gh[:, 0:CP] + gx[:, 0:CP])
    r = jax.nn.sigmoid(gh[:, CP:2 * CP] + gx[:, CP:2 * CP])
    q = jnp.tanh(jnp.dot((r * h).astype(jnp.bfloat16), wmain_ref[:, 5 * CP:6 * CP],
                         preferred_element_type=jnp.float32)
                 + gx[:, 2 * CP:3 * CP])
    out_ref[...] = (1.0 - z) * h + z * q


def pack_params(params):
    """Fuse the 11 per-gate weights/biases into two lane-dense slabs."""
    (wm, bm, wzh, wzx, bz, wrh, wrx, br, wqh, wqx, bq) = params
    eye = jnp.eye(PACK, dtype=jnp.float32)
    bd = lambda a: jnp.kron(eye, a)        # (r, c) -> (PACK*r, PACK*c) block-diag

    wx_zrq = jnp.concatenate([bd(wzx), bd(wrx), bd(wqx)], axis=1)    # (128, 384)
    wh_zr = jnp.concatenate([bd(wzh), bd(wrh)], axis=1)              # (128, 256)
    w_main = jnp.concatenate([wh_zr, wx_zrq, bd(wqh)], axis=1)       # (128, 768)

    # x' = x + m*(t*wm + bm)  =>  x'@Wx = x@Wx + [t*m | m | 1] @ w_tm
    tsdf_rows = jnp.concatenate([bd(wm), bd(bm)], axis=0) @ wx_zrq   # (8, 384)
    bias_row = jnp.concatenate([jnp.tile(bz, (1, PACK)),
                                jnp.tile(br, (1, PACK)),
                                jnp.tile(bq, (1, PACK))], axis=1)    # (1, 384)
    w_tm = jnp.concatenate(
        [tsdf_rows, bias_row,
         jnp.zeros((TM_COLS - 2 * PACK - 1, 3 * CP), jnp.float32)], axis=0)  # (16, 384)

    return w_main.astype(jnp.bfloat16), w_tm.astype(jnp.float32)


def convgru_fuse(h, x, t, m, packed):
    """h, x: (N, C); t, m: (N, 1). Returns fused hidden state (N, C)."""
    n = h.shape[0]
    if n == 0:
        return jnp.zeros((0, C), jnp.float32)
    w_main, w_tm = packed

    rows = _round_up(n, PACK) // PACK
    # Big tiles amortize the ~0.35us/step overhead; whenever rows > TILE_ROWS
    # the grid has >=2 steps so the "parallel" axis can shard over v7x's 2 TCs.
    tile = min(TILE_ROWS, _round_up(rows, 8))
    rows_p = _round_up(rows, tile)
    n_p = rows_p * PACK

    def pack_rows(a, width):
        return jnp.pad(a, ((0, n_p - n), (0, 0))).reshape(rows_p, width)

    h_p = pack_rows(h, CP)
    x_p = pack_rows(x, CP)
    tm = jnp.concatenate(
        [pack_rows(t * m, PACK), pack_rows(m, PACK),
         jnp.ones((rows_p, 1), jnp.float32),
         jnp.zeros((rows_p, TM_COLS - 2 * PACK - 1), jnp.float32)], axis=1)

    row_spec = lambda width: pl.BlockSpec((tile, width), lambda i: (i, 0))
    const_spec = lambda shape: pl.BlockSpec(shape, lambda i: (0, 0))

    out = pl.pallas_call(
        convgru_fuse_kernel,
        out_shape=jax.ShapeDtypeStruct((rows_p, CP), jnp.float32),
        grid=(rows_p // tile,),
        in_specs=[row_spec(CP), row_spec(CP), row_spec(TM_COLS),
                  const_spec((CP, 6 * CP)), const_spec((TM_COLS, 3 * CP))],
        out_specs=row_spec(CP),
        compiler_params=pltpu.CompilerParams(dimension_semantics=("parallel",)),
    )(h_p, x_p, tm, w_main, w_tm)
    return out.reshape(n_p, C)[:n]


def convgru_reference(h, x, t, m, params):
    """Plain-JAX f32 reference of the fused hot path (for sanity checking)."""
    (wm, bm, wzh, wzx, bz, wrh, wrx, br, wqh, wqx, bq) = params
    xp = x + m * (t * wm + bm)
    z = jax.nn.sigmoid(h @ wzh + xp @ wzx + bz)
    r = jax.nn.sigmoid(h @ wrh + xp @ wrx + br)
    q = jnp.tanh((r * h) @ wqh + xp @ wqx + bq)
    return (1.0 - z) * h + z * q


# ------------------------------------------------------------------
# Glue helpers (sparse <-> dense, eager JAX; data-dependent shapes)
# ------------------------------------------------------------------
def sparse_to_dense_channel(coords, values, dim, c, default):
    vol = jnp.full((dim[0], dim[1], dim[2], c), default, dtype=jnp.float32)
    return vol.at[coords[:, 0], coords[:, 1], coords[:, 2]].set(values)


def sparse_to_dense_bool(coords, dim):
    vol = jnp.zeros((dim[0], dim[1], dim[2]), dtype=bool)
    return vol.at[coords[:, 0], coords[:, 1], coords[:, 2]].set(True)


def init_params(key):
    ks = jax.random.split(key, 11)
    s = 0.2

    def w(k, shape):
        return jax.random.normal(k, shape, jnp.float32) * s

    wm = w(ks[0], (1, C)); bm = w(ks[1], (1, C))
    wzh = w(ks[2], (C, C)); wzx = w(ks[3], (C, C)); bz = w(ks[4], (1, C))
    wrh = w(ks[5], (C, C)); wrx = w(ks[6], (C, C)); br = w(ks[7], (1, C))
    wqh = w(ks[8], (C, C)); wqx = w(ks[9], (C, C)); bq = w(ks[10], (1, C))
    return (wm, bm, wzh, wzx, bz, wrh, wrx, br, wqh, wqx, bq)


# ------------------------------------------------------------------
# GlobalFusion.forward (GRU-fusion branch, direct_substitute=False)
# ------------------------------------------------------------------
def global_fusion_forward(coords, values_in, inputs, params,
                          grid_mask=None, occupancy=None, local_tsdf=None):
    packed = pack_params(params)
    batch_size = len(inputs['fragment'])
    dim_arr = jnp.asarray(DIM, jnp.int32)

    # Global hidden-state volume (empty: first fragment of the scene).
    global_coords = jnp.zeros((0, 3), jnp.int32)
    global_value = jnp.zeros((0, C), jnp.float32)

    updated_coords_all = values_all = None
    tsdf_target_all = occ_target_all = tsdf_pred_all = None
    near_coords_all = near_feat_all = None

    for batch in range(batch_size):
        origin = inputs['vol_origin_partial'][batch]
        global_origin = inputs['vol_origin'][batch]
        voxel_size = Cfg.VOXEL_SIZE * INTERVAL
        relative_origin = ((origin - global_origin) / voxel_size).astype(jnp.int32)

        batch_ind = jnp.nonzero(coords[:, 0] == batch)[0]
        if batch_ind.shape[0] == 0:
            continue
        coords_batch = (coords[batch_ind, 1:] // INTERVAL).astype(jnp.int32)
        values = values_in[batch_ind]
        grid_mask_b = (grid_mask[batch_ind] if grid_mask is not None
                       else jnp.ones((batch_ind.shape[0],), bool))
        occ_b = occupancy[batch_ind]

        # ---------------- convert2dense ----------------
        g_coords = global_coords - relative_origin[None, :]
        valid = jnp.all((g_coords < dim_arr) & (g_coords >= 0), axis=-1)
        valid_volume = sparse_to_dense_bool(coords_batch[grid_mask_b], DIM)
        if g_coords.shape[0] > 0:
            gcv = g_coords[valid]
            vis = valid_volume[gcv[:, 0], gcv[:, 1], gcv[:, 2]]
            local_visible = jnp.zeros((g_coords.shape[0],), bool)
            local_visible = local_visible.at[jnp.nonzero(valid)[0]].set(vis)
            valid = local_visible

        global_volume = sparse_to_dense_channel(g_coords[valid], global_value[valid],
                                                DIM, C, 0.0)
        current_volume = sparse_to_dense_channel(coords_batch, values, DIM, C, 0.0)
        valid_current_volume = sparse_to_dense_bool(coords_batch[occ_b], DIM)
        updated_mask = jnp.any(global_volume != 0, axis=-1) | valid_current_volume
        updated_coords = jnp.stack(jnp.nonzero(updated_mask), axis=-1).astype(jnp.int32)

        valid_global = jnp.all((g_coords < dim_arr) & (g_coords >= 0), axis=-1)
        near_mask = valid_global & (~valid)
        near_coords = g_coords[near_mask]
        near_feat = global_value[near_mask]

        # local TSDF predicted by previous (coarser) layer -> dense, default 1
        # (filtered per batch, matching torch's local_batch_ind selection)
        local_coords_all, local_vals_all = local_tsdf
        local_ind = jnp.nonzero(local_coords_all[:, 0] == batch)[0]
        local_coords_b = (local_coords_all[local_ind, 1:] // INTERVAL).astype(jnp.int32)
        local_tsdf_pred = sparse_to_dense_channel(local_coords_b,
                                                  local_vals_all[local_ind],
                                                  DIM, 1, 1.0)

        # ground-truth TSDF target
        occ_vol = inputs['occ_list'][N_SCALES - LAYER][batch]
        tsdf_vol = inputs['tsdf_list'][N_SCALES - LAYER][batch]
        coords_target = jnp.stack(jnp.nonzero(occ_vol), axis=-1).astype(jnp.int32)
        tsdf_target_sparse = tsdf_vol[occ_vol][:, None]
        target_volume = sparse_to_dense_channel(coords_target, tsdf_target_sparse,
                                                DIM, 1, 1.0)

        # ---------------- gather at updated coords ----------------
        ux, uy, uz = updated_coords[:, 0], updated_coords[:, 1], updated_coords[:, 2]
        values_u = current_volume[ux, uy, uz]
        global_values_u = global_volume[ux, uy, uz]
        tsdf_pred = local_tsdf_pred[ux, uy, uz]
        tsdf_target = target_volume[ux, uy, uz]
        occ_target = jnp.abs(tsdf_target) < 1

        # ---------------- fusion (Pallas hot path) ----------------
        n_upd = values_u.shape[0]
        n_near = near_feat.shape[0]
        h_frag = jnp.concatenate([global_values_u, near_feat], axis=0)
        x_frag = jnp.concatenate([values_u, jnp.zeros_like(near_feat)], axis=0)
        t_frag = jnp.concatenate([tsdf_pred, jnp.ones((n_near, 1), jnp.float32)], axis=0)
        m_frag = jnp.concatenate([jnp.ones((n_upd, 1), jnp.float32),
                                  jnp.zeros((n_near, 1), jnp.float32)], axis=0)
        fused = convgru_fuse(h_frag, x_frag, t_frag, m_frag, packed)
        values_new = fused[:n_upd]

        # ---------------- update_map (global state substitution) ----------------
        global_value = jnp.concatenate([global_value[~valid], values_new], axis=0)
        global_coords = jnp.concatenate(
            [global_coords[~valid], updated_coords + relative_origin[None, :]], axis=0)

        # ---------------- accumulate per-batch outputs ----------------
        uc = jnp.concatenate([jnp.full((n_upd, 1), batch, jnp.int32),
                              updated_coords * INTERVAL], axis=1)
        nc = jnp.concatenate([jnp.full((n_near, 1), batch, jnp.int32),
                              near_coords * INTERVAL], axis=1)
        if updated_coords_all is None:
            updated_coords_all, values_all = uc, values_new
            tsdf_target_all, occ_target_all = tsdf_target, occ_target
            tsdf_pred_all = tsdf_pred
            near_coords_all, near_feat_all = nc, near_feat
        else:
            updated_coords_all = jnp.concatenate([updated_coords_all, uc])
            values_all = jnp.concatenate([values_all, values_new])
            tsdf_target_all = jnp.concatenate([tsdf_target_all, tsdf_target])
            occ_target_all = jnp.concatenate([occ_target_all, occ_target])
            tsdf_pred_all = jnp.concatenate([tsdf_pred_all, tsdf_pred])
            near_coords_all = jnp.concatenate([near_coords_all, nc])
            near_feat_all = jnp.concatenate([near_feat_all, near_feat])

    return (updated_coords_all, values_all, tsdf_target_all, occ_target_all,
            tsdf_pred_all, near_coords_all, near_feat_all)


# ------------------------------------------------------------------
# Demo driver
# ------------------------------------------------------------------
if __name__ == "__main__":
    key = jax.random.PRNGKey(0)
    k1, k2, k3, k4, k5, k6, kp, kc = jax.random.split(key, 8)

    params = init_params(kp)
    packed = pack_params(params)

    # --- sanity check: packed/fused Pallas kernel vs plain-JAX f32 reference ---
    kc1, kc2, kc3, kc4 = jax.random.split(kc, 4)
    n_chk = 37   # deliberately not a multiple of PACK or 8 (exercises padding)
    h_chk = jax.random.normal(kc1, (n_chk, C), jnp.float32)
    x_chk = jax.random.normal(kc2, (n_chk, C), jnp.float32)
    t_chk = jax.random.uniform(kc3, (n_chk, 1), jnp.float32, -1.0, 1.0)
    m_chk = jax.random.bernoulli(kc4, 0.5, (n_chk, 1)).astype(jnp.float32)
    got = convgru_fuse(h_chk, x_chk, t_chk, m_chk, packed)
    ref = convgru_reference(h_chk, x_chk, t_chk, m_chk, params)
    err = float(jnp.max(jnp.abs(got - ref)))
    assert err < 0.2, f"packed ConvGRU kernel mismatch: max abs err {err}"

    # --- GlobalFusion forward, single fragment ---
    num_vox = 100
    flat = jax.random.permutation(k1, DIM[0] * DIM[1] * DIM[2])[:num_vox]
    xs = flat // (DIM[1] * DIM[2])
    ys = (flat // DIM[2]) % DIM[1]
    zs = flat % DIM[2]
    coords = jnp.stack([jnp.zeros_like(xs), xs, ys, zs], axis=-1).astype(jnp.int32)
    values_in = jax.random.normal(k2, (num_vox, C), jnp.float32)
    grid_mask = jnp.ones((num_vox,), bool)
    occupancy = jax.random.bernoulli(k3, 0.7, (num_vox,))

    # previous-layer upsampled TSDF prediction (exercises the tsdf_mlp path)
    local_tsdf = (coords,
                  jax.random.uniform(k4, (num_vox, 1), jnp.float32, -1.0, 1.0))

    occ_vol = jax.random.bernoulli(k5, 0.3, tuple(DIM))
    tsdf_vol = jax.random.uniform(k6, tuple(DIM), jnp.float32, -1.0, 1.0)

    inputs = {
        'fragment': ['frag_0'],
        'scene': ['scene_0'],
        'vol_origin': [jnp.zeros((3,), jnp.float32)],
        'vol_origin_partial': [jnp.zeros((3,), jnp.float32)],
        'occ_list': [[occ_vol]],
        'tsdf_list': [[tsdf_vol]],
        'world_to_aligned_camera': jnp.eye(4)[None],
    }

    outs = global_fusion_forward(coords, values_in, inputs, params,
                                 grid_mask=grid_mask, occupancy=occupancy,
                                 local_tsdf=local_tsdf)
    jax.block_until_ready(outs)
    assert outs[1].shape[-1] == C and outs[0].shape[-1] == 4
    print("KERNEL_OK")
</pallas_src>

<mosaic_0001>
module attributes {stable_mosaic.version = 11 : i64} {
  func.func @convgru_fuse_kernel(%arg0: i32, %arg1: memref<16x128xf32, #tpu.memory_space<vmem>>, %arg2: memref<16x128xf32, #tpu.memory_space<vmem>>, %arg3: memref<16x16xf32, #tpu.memory_space<vmem>>, %arg4: memref<128x768xbf16, #tpu.memory_space<vmem>>, %arg5: memref<16x384xf32, #tpu.memory_space<vmem>>, %arg6: memref<16x128xf32, #tpu.memory_space<vmem>>) attributes {dimension_semantics = [#tpu.dimension_semantics<parallel>], iteration_bounds = array<i64: 1>, scalar_prefetch = 0 : i64, scratch_operands = 0 : i64, tpu.core_type = #tpu.core_type<tc>, window_params = [{transform_indices = @transform_0, window_bounds = array<i64: 16, 128>}, {transform_indices = @transform_1, window_bounds = array<i64: 16, 128>}, {transform_indices = @transform_2, window_bounds = array<i64: 16, 16>}, {pipeline_mode = #tpu.pipeline_mode<synchronous>, transform_indices = @transform_3, window_bounds = array<i64: 128, 768>}, {pipeline_mode = #tpu.pipeline_mode<synchronous>, transform_indices = @transform_4, window_bounds = array<i64: 16, 384>}, {transform_indices = @transform_5, window_bounds = array<i64: 16, 128>}]} {
    %c0 = arith.constant 0 : index
    %c0_0 = arith.constant 0 : index
    %0 = vector.load %arg1[%c0, %c0_0] : memref<16x128xf32, #tpu.memory_space<vmem>>, vector<16x128xf32>
    %c0_1 = arith.constant 0 : index
    %c0_2 = arith.constant 0 : index
    %1 = vector.load %arg2[%c0_1, %c0_2] : memref<16x128xf32, #tpu.memory_space<vmem>>, vector<16x128xf32>
    %2 = arith.truncf %0 : vector<16x128xf32> to vector<16x128xbf16>
    %3 = arith.truncf %1 : vector<16x128xf32> to vector<16x128xbf16>
    %c0_3 = arith.constant 0 : index
    %c0_4 = arith.constant 0 : index
    %4 = vector.load %arg4[%c0_3, %c0_4] : memref<128x768xbf16, #tpu.memory_space<vmem>>, vector<128x256xbf16>
    %cst = arith.constant dense<0.000000e+00> : vector<16x256xf32>
    %5 = tpu.matmul %2, %4, %cst {dimension_numbers = #tpu.dot_dimension_numbers<[1], [0], [0], [1], [0, 0, 1, 1], [], []>} : vector<16x128xbf16>, vector<128x256xbf16>, vector<16x256xf32> -> vector<16x256xf32>
    %c0_5 = arith.constant 0 : index
    %c256 = arith.constant 256 : index
    %6 = vector.load %arg4[%c0_5, %c256] : memref<128x768xbf16, #tpu.memory_space<vmem>>, vector<128x384xbf16>
    %cst_6 = arith.constant dense<0.000000e+00> : vector<16x384xf32>
    %7 = tpu.matmul %3, %6, %cst_6 {dimension_numbers = #tpu.dot_dimension_numbers<[1], [0], [0], [1], [0, 0, 1, 1], [], []>} : vector<16x128xbf16>, vector<128x384xbf16>, vector<16x384xf32> -> vector<16x384xf32>
    %c0_7 = arith.constant 0 : index
    %c0_8 = arith.constant 0 : index
    %8 = vector.load %arg3[%c0_7, %c0_8] : memref<16x16xf32, #tpu.memory_space<vmem>>, vector<16x16xf32>
    %c0_9 = arith.constant 0 : index
    %c0_10 = arith.constant 0 : index
    %9 = vector.load %arg5[%c0_9, %c0_10] : memref<16x384xf32, #tpu.memory_space<vmem>>, vector<16x384xf32>
    %cst_11 = arith.constant dense<0.000000e+00> : vector<16x384xf32>
    %10 = tpu.matmul %8, %9, %cst_11 {dimension_numbers = #tpu.dot_dimension_numbers<[1], [0], [0], [1], [0, 0, 1, 1], [], []>} : vector<16x16xf32>, vector<16x384xf32>, vector<16x384xf32> -> vector<16x384xf32>
    %11 = arith.addf %7, %10 : vector<16x384xf32>
    %12 = vector.extract_strided_slice %5 {offsets = [0, 0], sizes = [16, 128], strides = [1, 1]} : vector<16x256xf32> to vector<16x128xf32>
    %13 = vector.extract_strided_slice %11 {offsets = [0, 0], sizes = [16, 128], strides = [1, 1]} : vector<16x384xf32> to vector<16x128xf32>
    %14 = arith.addf %12, %13 : vector<16x128xf32>
    %15 = arith.negf %14 : vector<16x128xf32>
    %16 = math.exp %15 : vector<16x128xf32>
    %cst_12 = arith.constant 1.000000e+00 : f32
    %17 = vector.broadcast %cst_12 : f32 to vector<16x128xf32>
    %18 = arith.addf %17, %16 : vector<16x128xf32>
    %19 = arith.divf %17, %18 : vector<16x128xf32>
    %20 = vector.extract_strided_slice %5 {offsets = [0, 128], sizes = [16, 128], strides = [1, 1]} : vector<16x256xf32> to vector<16x128xf32>
    %21 = vector.extract_strided_slice %11 {offsets = [0, 128], sizes = [16, 128], strides = [1, 1]} : vector<16x384xf32> to vector<16x128xf32>
    %22 = arith.addf %20, %21 : vector<16x128xf32>
    %23 = arith.negf %22 : vector<16x128xf32>
    %24 = math.exp %23 : vector<16x128xf32>
    %cst_13 = arith.constant 1.000000e+00 : f32
    %25 = vector.broadcast %cst_13 : f32 to vector<16x128xf32>
    %26 = arith.addf %25, %24 : vector<16x128xf32>
    %27 = arith.divf %25, %26 : vector<16x128xf32>
    %28 = arith.mulf %27, %0 : vector<16x128xf32>
    %29 = arith.truncf %28 : vector<16x128xf32> to vector<16x128xbf16>
    %c0_14 = arith.constant 0 : index
    %c640 = arith.constant 640 : index
    %30 = vector.load %arg4[%c0_14, %c640] : memref<128x768xbf16, #tpu.memory_space<vmem>>, vector<128x128xbf16>
    %cst_15 = arith.constant dense<0.000000e+00> : vector<16x128xf32>
    %31 = tpu.matmul %29, %30, %cst_15 {dimension_numbers = #tpu.dot_dimension_numbers<[1], [0], [0], [1], [0, 0, 1, 1], [], []>} : vector<16x128xbf16>, vector<128x128xbf16>, vector<16x128xf32> -> vector<16x128xf32>
    %32 = vector.extract_strided_slice %11 {offsets = [0, 256], sizes = [16, 128], strides = [1, 1]} : vector<16x384xf32> to vector<16x128xf32>
    %33 = arith.addf %31, %32 : vector<16x128xf32>
    %34 = math.tanh %33 : vector<16x128xf32>
    %cst_16 = arith.constant 1.000000e+00 : f32
    %35 = vector.broadcast %cst_16 : f32 to vector<16x128xf32>
    %36 = arith.subf %35, %19 : vector<16x128xf32>
    %37 = arith.mulf %36, %0 : vector<16x128xf32>
    %38 = arith.mulf %19, %34 : vector<16x128xf32>
    %39 = arith.addf %37, %38 : vector<16x128xf32>
    %c0_17 = arith.constant 0 : index
    %c0_18 = arith.constant 0 : index
    %40 = vector.load %arg6[%c0_17, %c0_18] : memref<16x128xf32, #tpu.memory_space<vmem>>, vector<16x128xf32>
    tpu.vector_store %arg6[%c0_17, %c0_18], %39 {strides = array<i32>} : memref<16x128xf32, #tpu.memory_space<vmem>>, vector<16x128xf32>,
    return
  }
  func.func @transform_0(%arg0: i32) -> (i32, i32) {
    %c0_i32 = arith.constant 0 : i32
    %c0_i32_0 = arith.constant 0 : i32
    return %arg0, %c0_i32 : i32, i32
  }
  func.func @transform_1(%arg0: i32) -> (i32, i32) {
    %c0_i32 = arith.constant 0 : i32
    %c0_i32_0 = arith.constant 0 : i32
    return %arg0, %c0_i32 : i32, i32
  }
  func.func @transform_2(%arg0: i32) -> (i32, i32) {
    %c0_i32 = arith.constant 0 : i32
    %c0_i32_0 = arith.constant 0 : i32
    return %arg0, %c0_i32 : i32, i32
  }
  func.func @transform_3(%arg0: i32) -> (i32, i32) {
    %c0_i32 = arith.constant 0 : i32
    %c0_i32_0 = arith.constant 0 : i32
    %c0_i32_1 = arith.constant 0 : i32
    return %c0_i32, %c0_i32_0 : i32, i32
  }
  func.func @transform_4(%arg0: i32) -> (i32, i32) {
    %c0_i32 = arith.constant 0 : i32
    %c0_i32_0 = arith.constant 0 : i32
    %c0_i32_1 = arith.constant 0 : i32
    return %c0_i32, %c0_i32_0 : i32, i32
  }
  func.func @transform_5(%arg0: i32) -> (i32, i32) {
    %c0_i32 = arith.constant 0 : i32
    %c0_i32_0 = arith.constant 0 : i32
    return %arg0, %c0_i32 : i32, i32
  }
}

</mosaic_0001>

<bundles_post_ra>
// kernel: tpu_custom_call.1
= control target key start
LH: loop header
LB: loop body
LE: loop exit
PB: predicated region body
PF: predicated region fallthrough
CT: control target
= control target key end

     0   :  { %10 = vsyncpa [#allocation3], 0  ;;  %s1264_s0 = inlined_call_operand.hbm [shape: f32[16,128], index: 0, kind: input, shape index: {}]   ;;  %s1265_s1 = inlined_call_operand.hbm [shape: f32[16,128], index: 1, kind: input, shape index: {}]   ;;  %s1266_s2 = inlined_call_operand.hbm [shape: f32[16,16], index: 2, kind: input, shape index: {}]   ;;  %s1267_s3 = inlined_call_operand.hbm [shape: bf16[128,768], index: 3, kind: input, shape index: {}]   ;;  %s1268_s4 = inlined_call_operand.hbm [shape: f32[16,384], index: 4, kind: input, shape index: {}]   ;;  %s1269_s5 = inlined_call_operand.hbm [shape: f32[16,128], index: 5, kind: output, shape index: {}]  }
   0x1   :  { %11 = vsyncpa [#allocation6], 0 }
   0x2   :  { %12 = vsyncpa [#allocation9], 0 }
   0x3   :  { %13 = vsyncpa [#allocation4], 0  ;;  %s1163_s18 = smov [#allocation5]   ;;  %s1164_s20 = smov [#allocation8]  }
   0x4   :  { %s31_s19 = sshll.u32 %s1163_s18, 4  ;;  %s55_s21 = sshll.u32 %s1164_s20, 4  ;;  %s32_s19 = int_to_ptr.vmem [resolvable:$true] %s31_s19  ;;  %s56_s21 = int_to_ptr.vmem [resolvable:$true] %s55_s21 }
   0x5   :  { %s1043_s22 = scalar_lea.vmem %s32_s19, 256  ;;  %p1048_p1 = scmp.lt.s32.totalorder %s32_s19, %s32_s19 }
   0x6   :  { %p1044_p0 = scmp.ne.s32.totalorder %s32_s19, %s1043_s22  ;;  %p1049_p2 = scmp.lt.s32.totalorder %s1043_s22, %s1043_s22 }
   0x8   :  { %p1050_p3 = por %p1049_p2, %p1048_p1 }
   0xa   :  { %p1051_p4 = pnand %p1050_p3, %p1044_p0 }
   0xc   :  { %1054 = shalt.err (!%p1051_p4)
}
   0xd   :  { %s1165_s23 = smov 128   ;;  %s1166_s24 = smov 8  }
   0xe   :  { %37 = dma.hbm_to_vmem [thread:$0]  %s1265_s1, 256, %s32_s19, [#allocation6], %s1165_s23, %s1165_s23, %s1166_s24  }
   0xf   :  { %s1063_s27 = scalar_lea.vmem %s56_s21, 6144  ;;  %p1068_p6 = scmp.lt.s32.totalorder %s56_s21, %s56_s21 }
  0x10   :  { %p1064_p5 = scmp.ne.s32.totalorder %s56_s21, %s1063_s27  ;;  %p1069_p7 = scmp.lt.s32.totalorder %s1063_s27, %s1063_s27 }
  0x12   :  { %p1070_p8 = por %p1069_p7, %p1068_p6 }
  0x14   :  { %p1071_p9 = pnand %p1070_p8, %p1064_p5 }
  0x16   :  { %1074 = shalt.err (!%p1071_p9)
}
  0x17   :  { %s1167_s28 = smov 384   ;;  %s1168_s29 = smov 24  }
  0x18   :  { %61 = dma.hbm_to_vmem [thread:$0]  %s1267_s3, 6144, %s56_s21, [#allocation9], %s1167_s28, %s1167_s28, %s1168_s29  }
  0x19   :  { %s1169_s7 = smov [#allocation2]   ;;  %s1170_s9 = smov [#allocation7]  }
  0x1a   :  { %s19_s8 = sshll.u32 %s1169_s7, 4  ;;  %s43_s1 = sshll.u32 %s1170_s9, 4  ;;  %s20_s8 = int_to_ptr.vmem [resolvable:$true] %s19_s8  ;;  %s44_s1 = int_to_ptr.vmem [resolvable:$true] %s43_s1 }
  0x1b   :  { %s1083_s10 = scalar_lea.vmem %s20_s8, 256  ;;  %p1088_p11 = scmp.lt.s32.totalorder %s20_s8, %s20_s8 }
  0x1c   :  { %p1084_p10 = scmp.ne.s32.totalorder %s20_s8, %s1083_s10  ;;  %p1089_p12 = scmp.lt.s32.totalorder %s1083_s10, %s1083_s10 }
  0x1e   :  { %p1090_p13 = por %p1089_p12, %p1088_p11 }
  0x20   :  { %p1091_p0 = pnand %p1090_p13, %p1084_p10 }
  0x22   :  { %1094 = shalt.err (!%p1091_p0)
}
  0x23   :  { %25 = dma.hbm_to_vmem [thread:$0]  %s1264_s0, 256, %s20_s8, [#allocation3], %s1165_s23, %s1165_s23, %s1166_s24  }
  0x24   :  { %s1103_s3 = scalar_lea.vmem %s44_s1, 256  ;;  %p1108_p2 = scmp.lt.s32.totalorder %s44_s1, %s44_s1 }
  0x25   :  { %p1104_p1 = scmp.ne.s32.totalorder %s44_s1, %s1103_s3  ;;  %p1109_p3 = scmp.lt.s32.totalorder %s1103_s3, %s1103_s3 }
  0x27   :  { %p1110_p4 = por %p1109_p3, %p1108_p2 }
  0x29   :  { %p1111_p5 = pnand %p1110_p4, %p1104_p1 }
  0x2b   :  { %1114 = shalt.err (!%p1111_p5)
}
  0x2c   :  { %49 = dma.hbm_to_vmem [thread:$0]  %s1266_s2, 256, %s44_s1, [#allocation6], %s1165_s23, %s1165_s23, %s1166_s24  }
  0x2d   :  { %s1171_s15 = smov [#allocation10]  }
  0x2e   :  { %s67_s16 = sshll.u32 %s1171_s15, 4  ;;  %s68_s16 = int_to_ptr.vmem [resolvable:$true] %s67_s16 }
  0x2f   :  { %s1123_s17 = scalar_lea.vmem %s68_s16, 768  ;;  %p1128_p7 = scmp.lt.s32.totalorder %s68_s16, %s68_s16 }
  0x30   :  { %p1124_p6 = scmp.ne.s32.totalorder %s68_s16, %s1123_s17  ;;  %p1129_p8 = scmp.lt.s32.totalorder %s1123_s17, %s1123_s17 }
  0x32   :  { %p1130_p9 = por %p1129_p8, %p1128_p7 }
  0x34   :  { %p1131_p10 = pnand %p1130_p9, %p1124_p6 }
  0x36   :  { %1134 = shalt.err (!%p1131_p10)
}
  0x37   :  { %73 = dma.hbm_to_vmem [thread:$0]  %s1268_s4, 768, %s68_s16, [#allocation9], %s1167_s28, %s1167_s28, %s1168_s29  }
  0x38   :  { %1155 = dma.done.wait [#allocation3], 256  }
  0x39   :  { %1156 = vsyncadd [#allocation3], 4294967040 }
  0x3a   :  { %1157 = dma.done.wait [#allocation6], 512  }
  0x3b   :  { %1158 = vsyncadd [#allocation6], 4294966784 }
  0x3c   :  { %1159 = dma.done.wait [#allocation9], 6912  }
  0x3d   :  { %1160 = vsyncadd [#allocation9], 4294960384  ;;  %v1172_v0 = vmov 0   ;;  %v274_v1 = vld [vmem:[#allocation10 + $0x28] sm:$0xff]  ;;  %v271_v4 = vld [vmem:[#allocation10 + $0x10] sm:$0xff]  ;;  %vm275_vm0 = vcmask 130048  }
  0x3e   :  { %224 = vmatprep.mubr.bf16.mxu0 %v1172_v0  ;;  %891 = vmatprep.subr.mxu1 %v274_v1  ;;  %v951_v2 = vld [vmem:[#allocation8 + $0x154] ss:$24 sps:$4 sm:$0xff]   ;;  %v953_v3 = vld [vmem:[#allocation8 + $0x150] ss:$24 sps:$4 sm:$0xff]   ;;  %v957_v8 = vld [vmem:[#allocation8 + $0x124] ss:$24 sps:$4 sm:$0xff]  }
  0x3f   :  { %892 = vmatpush3.msra.mxu1 %v274_v1  ;;  %v1236_v5 = vld [vmem:[#allocation7] sm:$0xff]  ;;  %192 = vmatprep.subr.bf16.mxu0 %v951_v2  ;;  %v1238_v9 = vld [vmem:[#allocation7 + $0x8] sm:$0xff]  ;;  %v962_v11 = vld [vmem:[#allocation8 + $0x12c] ss:$24 sps:$4 sm:$0xff]   ;;  %v1173_v47 = vmov 0.0   ;;  %vm1174_vm1 = vmmov 0  }
  0x40   :  { %893 = vmatprep.subr.mxu1 %v271_v4  ;;  %v954_v6 = vld [vmem:[#allocation8 + $0x158] ss:$24 sps:$4 sm:$0xff]   ;;  %v956_v7 = vld [vmem:[#allocation8 + $0x15c] ss:$24 sps:$4 sm:$0xff]   ;;  %193 = vmatpush1.bf16.msra.mxu0 %v953_v3  ;;  %v960_v12 = vld [vmem:[#allocation8 + $0x128] ss:$24 sps:$4 sm:$0xff]  }
  0x41   :  { %894 = vmatpush3.msra.mxu1 %v271_v4  ;;  %895 = vmatprep.mubr.msk.f32.mxu1 %vm275_vm0, %v1236_v5  ;;  %v959_v10 = vld [vmem:[#allocation8 + $0x120] ss:$24 sps:$4 sm:$0xff]   ;;  %v963_v13 = vld [vmem:[#allocation8 + $0xf4] ss:$24 sps:$4 sm:$0xff]   ;;  %v965_v14 = vld [vmem:[#allocation8 + $0xf0] ss:$24 sps:$4 sm:$0xff]  }
  0x42   :  { %562 = vmatprep.subr.bf16.mxu1 %v956_v7  ;;  %194 = vmatprep.subr.bf16.mxu0 %v957_v8  ;;  %v968_v15 = vld [vmem:[#allocation8 + $0xfc] ss:$24 sps:$4 sm:$0xff]   ;;  %v966_v17 = vld [vmem:[#allocation8 + $0xf8] ss:$24 sps:$4 sm:$0xff]   ;;  %v974_v19 = vld [vmem:[#allocation8 + $0xcc] ss:$24 sps:$4 sm:$0xff]  }
  0x43   :  { %896 = vmatmul.mubr.msk.f32.vlgmr.msra.gmra.mxu1 %vm275_vm0, %v1238_v9  ;;  %v969_v16 = vld [vmem:[#allocation8 + $0xc4] ss:$24 sps:$4 sm:$0xff]   ;;  %v971_v18 = vld [vmem:[#allocation8 + $0xc0] ss:$24 sps:$4 sm:$0xff]   ;;  %v975_v20 = vld [vmem:[#allocation8 + $0x94] ss:$24 sps:$4 sm:$0xff]  }
  0x44   :  { %563 = vmatpush1.bf16.msra.mxu1 %v954_v6  ;;  %594 = vmatprep.mubr.bf16.mxu1 %v1172_v0  ;;  %v972_v21 = vld [vmem:[#allocation8 + $0xc8] ss:$24 sps:$4 sm:$0xff]   ;;  %v980_v23 = vld [vmem:[#allocation8 + $0x9c] ss:$24 sps:$4 sm:$0xff]   ;;  %v978_v25 = vld [vmem:[#allocation8 + $0x98] ss:$24 sps:$4 sm:$0xff]  }
  0x45   :  { %195 = vmatpush1.bf16.msra.mxu0 %v959_v10  ;;  %564 = vmatprep.subr.bf16.mxu1 %v962_v11  ;;  %v977_v22 = vld [vmem:[#allocation8 + $0x90] ss:$24 sps:$4 sm:$0xff]   ;;  %v981_v24 = vld [vmem:[#allocation8 + $0x64] ss:$24 sps:$4 sm:$0xff]   ;;  %v983_v26 = vld [vmem:[#allocation8 + $0x60] ss:$24 sps:$4 sm:$0xff]  }
  0x46   :  { %196 = vmatprep.subr.bf16.mxu0 %v963_v13  ;;  %v986_v27 = vld [vmem:[#allocation8 + $0x6c] ss:$24 sps:$4 sm:$0xff]   ;;  %v984_v29 = vld [vmem:[#allocation8 + $0x68] ss:$24 sps:$4 sm:$0xff]   ;;  %v992_v31 = vld [vmem:[#allocation8 + $0x3c] ss:$24 sps:$4 sm:$0xff]  }
  0x47   :  { %v987_v28 = vld [vmem:[#allocation8 + $0x34] ss:$24 sps:$4 sm:$0xff]   ;;  %v989_v30 = vld [vmem:[#allocation8 + $0x30] ss:$24 sps:$4 sm:$0xff]   ;;  %v993_v33 = vld [vmem:[#allocation8 + $0x4] ss:$24 sps:$4 sm:$0xff]  }
  0x48   :  { %565 = vmatpush1.bf16.msra.mxu1 %v960_v12  ;;  %v990_v32 = vld [vmem:[#allocation8 + $0x38] ss:$24 sps:$4 sm:$0xff]   ;;  %v998_v35 = vld [vmem:[#allocation8 + $0xc] ss:$24 sps:$4 sm:$0xff]   ;;  %v996_v38 = vld [vmem:[#allocation8 + $0x8] ss:$24 sps:$4 sm:$0xff]  }
  0x49   :  { %197 = vmatpush1.bf16.msra.mxu0 %v965_v14  ;;  %566 = vmatprep.subr.bf16.mxu1 %v968_v15  ;;  %v995_v34 = vld [vmem:[#allocation8] ss:$24 sps:$4 sm:$0xff]   ;;  %v1244_v36 = vld [vmem:[#allocation2] sm:$0xff]  ;;  %v93_v43 = vld [vmem:[#allocation5 + $0x8] sm:$0xff]  ;;  %s1175_s2 = smov [#allocation11]  }
  0x4a   :  { %198 = vmatprep.subr.bf16.mxu0 %v969_v16  ;;  %v1246_v37 = vld [vmem:[#allocation2 + $0x8] sm:$0xff]  ;;  %v273_v39 = vld [vmem:[#allocation10 + $0x20] sm:$0xff]  ;;  %v270_v44 = vld [vmem:[#allocation10 + $0x8] sm:$0xff]  ;;  %s799_s4 = sshll.u32 %s1175_s2, 4  ;;  %s800_s4 = int_to_ptr.vmem [resolvable:$true] %s799_s4 }
  0x4b   :  { %v92_v40 = vld [vmem:[#allocation5] sm:$0xff]  ;;  %v94_v41 = vpack.c.bf16 %v1246_v37, %v1244_v36  ;;  %v272_v42 = vld [vmem:[#allocation10 + $0x18] sm:$0xff]  ;;  %v1000_v49 = vld [vmem:[#allocation8 + $0x130] ss:$24 sps:$4 sm:$0xff]   ;;  %s1135_s19 = scalar_lea.vmem %s800_s4, 256  ;;  %p1140_p12 = scmp.lt.s32.totalorder %s800_s4, %s800_s4 }
  0x4c   :  { %567 = vmatpush1.bf16.msra.mxu1 %v966_v17  ;;  %v269_v45 = vld [vmem:[#allocation10] sm:$0xff]  ;;  %v95_v46 = vpack.c.bf16 %v93_v43, %v92_v40  ;;  %v1002_v51 = vld [vmem:[#allocation8 + $0xd0] ss:$24 sps:$4 sm:$0xff]   ;;  %v1008_v57 = vld [vmem:[#allocation8 + $0x134] ss:$24 sps:$4 sm:$0xff]   ;;  %p1136_p11 = scmp.ne.s32.totalorder %s800_s4, %s1135_s19  ;;  %p1141_p13 = scmp.lt.s32.totalorder %s1135_s19, %s1135_s19 }
  0x4d   :  { %199 = vmatpush1.bf16.msra.mxu0 %v971_v18  ;;  %568 = vmatprep.subr.bf16.mxu1 %v974_v19  ;;  %v999_v48 = vld [vmem:[#allocation8 + $0x160] ss:$24 sps:$4 sm:$0xff]   ;;  %v1004_v53 = vld [vmem:[#allocation8 + $0x70] ss:$24 sps:$4 sm:$0xff]   ;;  %v1007_v56 = vld [vmem:[#allocation8 + $0x164] ss:$24 sps:$4 sm:$0xff]  }
  0x4e   :  { %200 = vmatprep.subr.bf16.mxu0 %v975_v20  ;;  %v1001_v50 = vld [vmem:[#allocation8 + $0x100] ss:$24 sps:$4 sm:$0xff]   ;;  %v1006_v55 = vld [vmem:[#allocation8 + $0x10] ss:$24 sps:$4 sm:$0xff]   ;;  %v1009_v58 = vld [vmem:[#allocation8 + $0x104] ss:$24 sps:$4 sm:$0xff]   ;;  %p1142_p0 = por %p1141_p13, %p1140_p12 }
  0x4f   :  { %v1003_v52 = vld [vmem:[#allocation8 + $0xa0] ss:$24 sps:$4 sm:$0xff]   ;;  %v1010_v59 = vld [vmem:[#allocation8 + $0xd4] ss:$24 sps:$4 sm:$0xff]   ;;  %v1011_v60 = vld [vmem:[#allocation8 + $0xa4] ss:$24 sps:$4 sm:$0xff]  }
  0x50   :  { %569 = vmatpush1.bf16.msra.mxu1 %v972_v21  ;;  %v1005_v54 = vld [vmem:[#allocation8 + $0x40] ss:$24 sps:$4 sm:$0xff]   ;;  %v1012_v61 = vld [vmem:[#allocation8 + $0x74] ss:$24 sps:$4 sm:$0xff]   ;;  %v1013_v62 = vld [vmem:[#allocation8 + $0x44] ss:$24 sps:$4 sm:$0xff]   ;;  %p1143_p1 = pnand %p1142_p0, %p1136_p11 }
  0x51   :  { %201 = vmatpush1.bf16.msra.mxu0 %v977_v22  ;;  %570 = vmatprep.subr.bf16.mxu1 %v980_v23  ;;  %v1014_v63 = vld [vmem:[#allocation8 + $0x14] ss:$24 sps:$4 sm:$0xff]  }
  0x52   :  { %202 = vmatprep.subr.bf16.mxu0 %v981_v24 }
  0x54   :  { %571 = vmatpush1.bf16.msra.mxu1 %v978_v25 }
  0x55   :  { %203 = vmatpush1.bf16.msra.mxu0 %v983_v26  ;;  %572 = vmatprep.subr.bf16.mxu1 %v986_v27 }
  0x56   :  { %204 = vmatprep.subr.bf16.mxu0 %v987_v28 }
  0x58   :  { %573 = vmatpush1.bf16.msra.mxu1 %v984_v29 }
  0x59   :  { %205 = vmatpush1.bf16.msra.mxu0 %v989_v30  ;;  %574 = vmatprep.subr.bf16.mxu1 %v992_v31 }
  0x5a   :  { %206 = vmatprep.subr.bf16.mxu0 %v993_v33 }
  0x5c   :  { %575 = vmatpush1.bf16.msra.mxu1 %v990_v32 }
  0x5d   :  { %207 = vmatpush1.bf16.msra.mxu0 %v995_v34  ;;  %576 = vmatprep.subr.bf16.mxu1 %v998_v35 }
  0x5e   :  { %310 = vmatprep.subr.mxu0 %v273_v39 }
  0x60   :  { %225 = vmatmul.mubr.bf16.vlgmr.msra.gmra.mxu0 %v94_v41  ;;  %577 = vmatpush1.bf16.msra.mxu1 %v996_v38 }
  0x61   :  { %311 = vmatpush1.msra.mxu0 %v272_v42  ;;  %346 = vmatprep.mubr.f32.mxu0 %v1173_v47 }
  0x62   :  { %312 = vmatprep.subr.mxu0 %v270_v44  ;;  %918 = vmatprep.subr.bf16.mxu1 %v1173_v47 }
  0x63   :  { %595 = vmatmul.mubr.bf16.vlgmr.msra.gmra.mxu1 %v95_v46  ;;  %313 = vmatpush1.msra.mxu0 %v269_v45 }
  0x64   :  { %898 = vmatprep.subr.bf16.mxu0 %v1173_v47  ;;  %934 = vmatprep.mubr.msk.bf16.mxu1 %vm1174_vm1, %v1173_v47 }
  0x65   :  { %919 = vmatpush3.bf16.msra.mxu1 %v1007_v56 }
  0x66   :  { %920 = vmatprep.subr.bf16.mxu1 %v1173_v47 }
  0x68   :  { %829 = vmatmul.mubr.msk.f32.vlgmr.msra.gmra.mxu0 %vm275_vm0, %v1236_v5 }
  0x69   :  { %899 = vmatpush3.bf16.msra.mxu0 %v999_v48  ;;  %352 = vmatprep.mubr.f32.mxu0 %v1173_v47 }
  0x6a   :  { %900 = vmatprep.subr.bf16.mxu0 %v1173_v47  ;;  %921 = vmatpush3.bf16.msra.mxu1 %v1008_v57 }
  0x6b   :  { %922 = vmatprep.subr.bf16.mxu1 %v1173_v47 }
  0x6c   :  { %830 = vmatmul.mubr.msk.f32.gmra.mxu0 %vm275_vm0, %v1238_v9 }
  0x6d   :  { %901 = vmatpush3.bf16.msra.mxu0 %v1000_v49  ;;  %914 = vmatprep.mubr.msk.bf16.mxu0 %vm1174_vm1, %v1173_v47 }
  0x6e   :  { %902 = vmatprep.subr.bf16.mxu0 %v1173_v47  ;;  %923 = vmatpush3.bf16.msra.mxu1 %v1009_v58 }
  0x6f   :  { %924 = vmatprep.subr.bf16.mxu1 %v1173_v47 }
  0x71   :  { %903 = vmatpush3.bf16.msra.mxu0 %v1001_v50 }
  0x72   :  { %904 = vmatprep.subr.bf16.mxu0 %v1173_v47  ;;  %925 = vmatpush3.bf16.msra.mxu1 %v1010_v59 }
  0x73   :  { %926 = vmatprep.subr.bf16.mxu1 %v1173_v47 }
  0x75   :  { %905 = vmatpush3.bf16.msra.mxu0 %v1002_v51 }
  0x76   :  { %906 = vmatprep.subr.bf16.mxu0 %v1173_v47  ;;  %927 = vmatpush3.bf16.msra.mxu1 %v1011_v60 }
  0x77   :  { %928 = vmatprep.subr.bf16.mxu1 %v1173_v47 }
  0x79   :  { %907 = vmatpush3.bf16.msra.mxu0 %v1003_v52 }
  0x7a   :  { %908 = vmatprep.subr.bf16.mxu0 %v1173_v47  ;;  %929 = vmatpush3.bf16.msra.mxu1 %v1012_v61 }
  0x7b   :  { %930 = vmatprep.subr.bf16.mxu1 %v1173_v47 }
  0x7d   :  { %909 = vmatpush3.bf16.msra.mxu0 %v1004_v53 }
  0x7e   :  { %910 = vmatprep.subr.bf16.mxu0 %v1173_v47  ;;  %931 = vmatpush3.bf16.msra.mxu1 %v1013_v62 }
  0x7f   :  { %932 = vmatprep.subr.bf16.mxu1 %v1173_v47 }
  0x81   :  { %911 = vmatpush3.bf16.msra.mxu0 %v1005_v54 }
  0x82   :  { %912 = vmatprep.subr.bf16.mxu0 %v1173_v47  ;;  %933 = vmatpush3.bf16.msra.mxu1 %v1014_v63 }
  0x85   :  { %913 = vmatpush3.bf16.msra.mxu0 %v1006_v55 }
  0x88   :  { %915 = vmatmul.mubr.bf16.vlgmr.msra.gmra.mxu0 %v95_v46 }
 0x103   :  { %v897_v0 = vpop.f32.mrf.mxu1 }
 0x105   :  { %v425_v2 = vpop.f32.mrf.mxu1 }
 0x120   :  { %v226_v1 = vpop.f32.mrf.mxu0 }
 0x122   :  { %v228_v3 = vpop.f32.mrf.mxu0 }
 0x123   :  { %v596_v4 = vpop.f32.mrf.mxu1 }
 0x124   :  { %v230_v5 = vpop.f32.mrf.mxu0 }
 0x125   :  { %v598_v6 = vpop.f32.mrf.mxu1 }
 0x126   :  { %v232_v7 = vpop.f32.mrf.mxu0 }
 0x127   :  { %v600_v10 = vpop.f32.mrf.mxu1 }
 0x128   :  { %v348_v8 = vpop.f32.mrf.mxu0 }
 0x129   :  { %v597_v9 = vadd.f32 %v596_v4, %v348_v8  ;;  %v602_v17 = vpop.f32.mrf.mxu1 }
 0x12a   :  { %v350_v11 = vpop.f32.mrf.mxu0 }
 0x12b   :  { %v646_v12 = vadd.f32 %v597_v9, %v226_v1  ;;  %v599_v13 = vadd.f32 %v598_v6, %v350_v11 }
 0x12c   :  { %v354_v14 = vpop.f32.mrf.mxu0 }
 0x12d   :  { %v660_v15 = vadd.f32 %v599_v13, %v228_v3  ;;  %v601_v16 = vadd.f32 %v600_v10, %v354_v14  ;;  %v857_v40 = vmul.f32 -1.442695, %v646_v12 }
 0x12e   :  { %v356_v18 = vpop.f32.mrf.mxu0 }
 0x12f   :  { %v859_v19 = vmul.f32 -1.442695, %v660_v15  ;;  %v647_v20 = vadd.f32 %v601_v16, %v230_v5  ;;  %v603_v21 = vadd.f32 %v602_v17, %v356_v18 }
 0x131   :  { %1015 = vpow2.f32 %v859_v19  ;;  %v661_v22 = vadd.f32 %v603_v21, %v232_v7  ;;  %v858_v41 = vmul.f32 -1.442695, %v647_v20 }
 0x133   :  { %v860_v23 = vmul.f32 -1.442695, %v661_v22 }
 0x135   :  { %1017 = vpow2.f32 %v860_v23 }
 0x13e   :  { %v1016_v24 = vpop.eup %1015 }
 0x13f   :  { %v668_v25 = vadd.f32 1.0, %v1016_v24 }
 0x141   :  { %1019 = vrcp.f32 %v668_v25 }
 0x142   :  { %v1018_v26 = vpop.eup %1017 }
 0x143   :  { %v669_v27 = vadd.f32 1.0, %v1018_v26 }
 0x145   :  { %1021 = vrcp.f32 %v669_v27 }
 0x146   :  { %1023 = vpow2.f32 %v857_v40 }
 0x147   :  { %1025 = vpow2.f32 %v858_v41 }
 0x148   :  { %v639_v28 = vpop.f32.mrf.mxu0 }
 0x149   :  { %v640_v29 = vadd.f32 %v639_v28, %v425_v2 }
 0x14a   :  { %v916_v30 = vpop.f32.mrf.mxu0 }
 0x14c   :  { %v642_v31 = vpop.f32.mrf.mxu0 }
 0x14d   :  { %v643_v49 = vadd.f32 %v897_v0, %v642_v31 }
 0x14e   :  { %v917_v32 = vpop.f32.mrf.mxu0  ;;  %v1020_v33 = vpop.eup %1019 }
 0x14f   :  { %v674_v35 = vmul.f32 %v1020_v33, %v1244_v36 }
 0x152   :  { %v1022_v34 = vpop.eup %1021 }
 0x153   :  { %v675_v38 = vmul.f32 %v1022_v34, %v1246_v37  ;;  %v1024_v42 = vpop.eup %1023 }
 0x154   :  { %v654_v43 = vadd.f32 1.0, %v1024_v42  ;;  %v1026_v44 = vpop.eup %1025 }
 0x155   :  { %v676_v39 = vpack.c.bf16 %v675_v38, %v674_v35  ;;  %v655_v45 = vadd.f32 1.0, %v1026_v44 }
 0x156   :  { %1027 = vrcp.f32 %v654_v43 }
 0x157   :  { %935 = vmatmul.mubr.bf16.vlgmr.msra.gmra.mxu1 %v676_v39  ;;  %1029 = vrcp.f32 %v655_v45 }
 0x163   :  { %v1028_v53 = vpop.eup %1027 }
 0x164   :  { %v784_v54 = vsub.f32 1.0, %v1028_v53  ;;  %v1030_v55 = vpop.eup %1029 }
 0x165   :  { %v785_v57 = vsub.f32 1.0, %v1030_v55 }
 0x166   :  { %v786_v58 = vmul.f32 %v784_v54, %v1244_v36 }
 0x167   :  { %v787_v62 = vmul.f32 %v785_v57, %v1246_v37 }
 0x217   :  { %v775_v46 = vpop.f32.mrf.mxu1 }
 0x218   :  { %v776_v47 = vadd.f32 %v775_v46, %v640_v29 }
 0x219   :  { %v936_v48 = vpop.f32.mrf.mxu1 }
 0x21a   :  { %1031 = vtanh.f32 %v776_v47 }
 0x21b   :  { %v778_v50 = vpop.f32.mrf.mxu1 }
 0x21c   :  { %v779_v51 = vadd.f32 %v778_v50, %v643_v49 }
 0x21d   :  { %v937_v52 = vpop.f32.mrf.mxu1 }
 0x21e   :  { %1033 = vtanh.f32 %v779_v51 }
 0x227   :  { %v1032_v56 = vpop.eup %1031 }
 0x228   :  { %v788_v59 = vmul.f32 %v1032_v56, %v1028_v53 }
 0x22a   :  { %v790_v60 = vadd.f32 %v788_v59, %v786_v58 }
 0x22b   :  { %v1034_v61 = vpop.eup %1033 }
 0x22c   :  { %v789_v63 = vmul.f32 %v1034_v61, %v1030_v55  ;;  %792 = vst [vmem:[#allocation11] sm:$0xff] %v790_v60 }
 0x22e   :  { %v791_v0 = vadd.f32 %v789_v63, %v787_v62 }
 0x230   :  { %793 = vst [vmem:[#allocation11 + $0x8] sm:$0xff] %v791_v0 }
 0x231   :  { %1146 = shalt.err (!%p1143_p1)
}
 0x232   :  { %805 = dma.vmem_to_hbm [thread:$0]  %s800_s4, 256, %s1269_s5, [#allocation4], %s1165_s23, %s1165_s23, %s1166_s24  }
 0x233   :  { %1161 = dma.done.wait [#allocation4], 256  }
 0x234   :  { %1162 = vsyncadd [#allocation4], 4294967040 }
 0x235   :  { %809 = vsyncpa [#allocation3], 1 }
 0x236   :  { %810 = vsyncpa [#allocation6], 1 }
 0x237   :  { %811 = vsyncpa [#allocation9], 1 }
 0x238   :  { %812 = vsyncpa [#allocation4], 1 }

</bundles_post_ra>
